<compile_context>
chip_gen: v7x
topology: tpu7x:2x2x1
jax: 0.10.0
libtpu: 0.0.40
codegen_flags: <defaults>
</compile_context>

<pallas_src>
import functools
from enum import IntEnum

import jax
import jax.numpy as jnp
from jax import lax
from jax.experimental import pallas as pl
from jax.experimental.pallas import tpu as pltpu


class PoolingType(IntEnum):
    LAST = 0
    CLS = 1


def _round_up(x: int, m: int) -> int:
    return ((x + m - 1) // m) * m


def _pooler_kernel(idx_ref, hs_hbm, out_ref, *scratch, normalize: bool,
                   rows_per_block: int, batch: int):
    if normalize:
        gather_buf, sems = scratch
    else:
        (sems,) = scratch

    base = pl.program_id(0) * rows_per_block

    # Issue all valid row-gather DMAs before waiting on any of them (overlapped small DMAs).
    # normalize=False: DMA straight HBM->HBM into the output row (no VMEM round-trip).
    for r in range(rows_per_block):
        row = base + r

        @pl.when(row < batch)
        def _start(r=r, row=row):
            tok = idx_ref[row]
            dst = gather_buf.at[r] if normalize else out_ref.at[row]
            pltpu.make_async_copy(hs_hbm.at[tok], dst, sems.at[r]).start()

    for r in range(rows_per_block):
        row = base + r

        @pl.when(row < batch)
        def _wait(r=r, row=row):
            tok = idx_ref[row]  # rebuild wait descriptor from the SAME source slice
            dst = gather_buf.at[r] if normalize else out_ref.at[row]
            pltpu.make_async_copy(hs_hbm.at[tok], dst, sems.at[r]).wait()

    if normalize:
        x = gather_buf[...].astype(jnp.float32)                   # (rows, H)
        sq = jnp.sum(x * x, axis=-1, keepdims=True)               # (rows, 1)
        # 1 / max(||x||, 1e-12) == rsqrt(max(||x||^2, 1e-24)); single EUP op (sqrt monotone).
        inv = lax.rsqrt(jnp.maximum(sq, 1e-24))
        out_ref[...] = (x * inv).astype(out_ref.dtype)
        # NOTE: tail (row >= batch) rows of gather_buf are stale; the resulting garbage output
        # rows are sliced off by the wrapper. Rows are independent, so no contamination.


def pallas_pool(hidden_states: jax.Array,
                extend_seq_lens: jax.Array,
                pooling_type: PoolingType,
                normalize: bool,
                rows_per_block: int | None = None) -> jax.Array:
    """Returns pooled embeddings of shape [batch, hidden]."""
    T, H = hidden_states.shape
    B = extend_seq_lens.shape[0]
    dt = hidden_states.dtype
    itemsize = jnp.dtype(dt).itemsize

    seq_lens = extend_seq_lens.astype(jnp.int32)
    csum = jnp.cumsum(seq_lens)
    if pooling_type == PoolingType.LAST:
        token_idx = csum - 1                                       # last token of each sequence
    elif pooling_type == PoolingType.CLS:
        token_idx = jnp.concatenate([jnp.zeros((1,), jnp.int32), csum[:-1]])  # first token
    else:
        raise ValueError(f"Invalid pooling type: {pooling_type}")
    # Clamp so degenerate (zero-length-sequence) indices can never produce an OOB DMA source.
    # (Behavior for zero-length sequences thus differs from torch's wrap-around -1 indexing.)
    token_idx = jnp.clip(token_idx.astype(jnp.int32), 0, T - 1)

    # Rows per grid step: dtype sublane multiple (8 for f32, 16 for bf16).
    sub = max(8, 32 // itemsize)
    if rows_per_block is None:
        if normalize:
            # v5e-safe VMEM budget: gather_buf + double-buffered (rows, H) output block.
            budget = 12 * 1024 * 1024
            max_rows = max(sub, (budget // (3 * H * itemsize)) // sub * sub)
            max_rows = min(max_rows, 512)
        else:
            max_rows = 256                                         # in-flight DMA / semaphore cap
        rows = min(max_rows, _round_up(B, sub))
    else:
        rows = max(sub, _round_up(rows_per_block, sub))
    num_blocks = pl.cdiv(B, rows)
    b_pad = num_blocks * rows

    kernel = functools.partial(_pooler_kernel, normalize=normalize,
                               rows_per_block=rows, batch=B)

    if normalize:
        out_specs = pl.BlockSpec((rows, H), lambda i, idx_ref: (i, 0))
        out_shape = jax.ShapeDtypeStruct((b_pad, H), dt)
        scratch_shapes = [
            pltpu.VMEM((rows, H), dt),                             # dense gather tile
            pltpu.SemaphoreType.DMA((rows,)),                      # one sem per in-flight row
        ]
    else:
        out_specs = pl.BlockSpec(memory_space=pl.ANY)              # HBM->HBM direct gather
        out_shape = jax.ShapeDtypeStruct((B, H), dt)
        scratch_shapes = [pltpu.SemaphoreType.DMA((rows,))]

    grid_spec = pltpu.PrefetchScalarGridSpec(
        num_scalar_prefetch=1,                                     # token_idx -> SMEM
        grid=(num_blocks,),
        in_specs=[pl.BlockSpec(memory_space=pl.ANY)],              # hidden_states stays in HBM
        out_specs=out_specs,
        scratch_shapes=scratch_shapes,
    )

    cost = pl.CostEstimate(
        flops=(3 * B * H) if normalize else 0,
        transcendentals=B if normalize else 0,
        bytes_accessed=2 * B * H * itemsize,
    )

    out = pl.pallas_call(
        kernel,
        grid_spec=grid_spec,
        out_shape=out_shape,
        compiler_params=pltpu.CompilerParams(
            dimension_semantics=("arbitrary",),
        ),
        cost_estimate=cost,
    )(token_idx, hidden_states)
    return out[:B]


class Pooler:
    """JAX/Pallas port of sglang Pooler."""

    def __init__(self, pooling_type: PoolingType, normalize: bool):
        self.pooling_type = pooling_type
        self.normalize = normalize

    def __call__(self, hidden_states, extend_seq_lens, rows_per_block=None):
        emb = pallas_pool(hidden_states, extend_seq_lens,
                          self.pooling_type, self.normalize,
                          rows_per_block=rows_per_block)
        return {"embeddings": emb}


def _reference(hidden_states, extend_seq_lens, pooling_type, normalize):
    seq_lens = extend_seq_lens.astype(jnp.int32)
    csum = jnp.cumsum(seq_lens)
    if pooling_type == PoolingType.LAST:
        idx = csum - 1
    else:
        idx = jnp.concatenate([jnp.zeros((1,), jnp.int32), csum[:-1]])
    pooled = hidden_states[idx]
    if normalize:
        norm = jnp.sqrt(jnp.sum(pooled.astype(jnp.float32) ** 2, axis=1, keepdims=True))
        pooled = (pooled.astype(jnp.float32) / jnp.maximum(norm, 1e-12)).astype(hidden_states.dtype)
    return pooled


if __name__ == "__main__":
    key = jax.random.PRNGKey(0)
    ok = True

    # Case 1: small serving batch, single grid step with tail-skipped padded rows.
    hidden = 128
    extend_seq_lens = jnp.array([3, 2, 3], dtype=jnp.int32)        # total tokens = 8
    total_tokens = int(jnp.sum(extend_seq_lens))
    hidden_states = jax.random.normal(key, (total_tokens, hidden), dtype=jnp.float32)

    for ptype in (PoolingType.LAST, PoolingType.CLS):
        for normalize in (True, False):
            pooler = Pooler(ptype, normalize)
            out = pooler(hidden_states, extend_seq_lens)["embeddings"]
            out = jax.block_until_ready(out)
            ref = _reference(hidden_states, extend_seq_lens, ptype, normalize)
            if out.shape != ref.shape or not jnp.allclose(out, ref, atol=1e-5, rtol=1e-5):
                ok = False

    # Case 2: larger batch with a forced small rows_per_block to exercise the
    # multi-block grid path and the pl.when tail guard.
    key2 = jax.random.PRNGKey(1)
    extend_seq_lens2 = jnp.arange(1, 12, dtype=jnp.int32)          # batch = 11
    total_tokens2 = int(jnp.sum(extend_seq_lens2))
    hidden_states2 = jax.random.normal(key2, (total_tokens2, hidden), dtype=jnp.float32)

    for ptype in (PoolingType.LAST, PoolingType.CLS):
        for normalize in (True, False):
            pooler = Pooler(ptype, normalize)
            out = pooler(hidden_states2, extend_seq_lens2, rows_per_block=8)["embeddings"]
            out = jax.block_until_ready(out)
            ref = _reference(hidden_states2, extend_seq_lens2, ptype, normalize)
            if out.shape != ref.shape or not jnp.allclose(out, ref, atol=1e-5, rtol=1e-5):
                ok = False

    if ok:
        print("KERNEL_OK")
    else:
        print("KERNEL_MISMATCH")
</pallas_src>

<mosaic_0001>
module attributes {stable_mosaic.version = 11 : i64} {
  func.func @_pooler_kernel(%arg0: i32, %arg1: memref<3xi32, #tpu.memory_space<smem>>, %arg2: memref<8x128xf32, #tpu.memory_space<any>>, %arg3: memref<8x128xf32, #tpu.memory_space<vmem>>, %arg4: memref<8x128xf32, #tpu.memory_space<vmem>>, %arg5: memref<8x!tpu.dma_semaphore, #tpu.memory_space<semaphore_mem>>) attributes {dimension_semantics = [#tpu.dimension_semantics<arbitrary>], iteration_bounds = array<i64: 1>, scalar_prefetch = 1 : i64, scratch_operands = 2 : i64, tpu.core_type = #tpu.core_type<tc>, window_params = [{}, {transform_indices = @transform_1, window_bounds = array<i64: 8, 128>}]} {
    %c8_i32 = arith.constant 8 : i32
    %0 = arith.muli %arg0, %c8_i32 : i32
    %c0_i32 = arith.constant 0 : i32
    %1 = arith.addi %0, %c0_i32 : i32
    %c3_i32 = arith.constant 3 : i32
    %2 = arith.cmpi slt, %1, %c3_i32 : i32
    %3 = arith.extui %2 : i1 to i32
    %c0_i32_0 = arith.constant 0 : i32
    %4 = arith.cmpi ne, %3, %c0_i32_0 : i32
    scf.if %4 {
      %75 = arith.index_cast %1 : i32 to index
      %76 = memref.load %arg1[%75] : memref<3xi32, #tpu.memory_space<smem>>
      %c0_i32_44 = arith.constant 0 : i32
      %c0_i32_45 = arith.constant 0 : i32
      %c0_i32_46 = arith.constant 0 : i32
      %77 = tpu.memref_slice %arg2[%76, %c0_i32_46] : memref<8x128xf32, #tpu.memory_space<any>> -> memref<1x128xf32, #tpu.memory_space<any>>
      %78 = tpu.memref_squeeze %77 : memref<1x128xf32, #tpu.memory_space<any>> -> memref<128xf32, #tpu.memory_space<any>>
      %c0_i32_47 = arith.constant 0 : i32
      %79 = tpu.memref_slice %arg4[%c0_i32_44, %c0_i32_47] : memref<8x128xf32, #tpu.memory_space<vmem>> -> memref<1x128xf32, #tpu.memory_space<vmem>>
      %80 = tpu.memref_squeeze %79 : memref<1x128xf32, #tpu.memory_space<vmem>> -> memref<128xf32, #tpu.memory_space<vmem>>
      %81 = tpu.memref_slice %arg5[%c0_i32_45] : memref<8x!tpu.dma_semaphore, #tpu.memory_space<semaphore_mem>> -> memref<1x!tpu.dma_semaphore, #tpu.memory_space<semaphore_mem>>
      %82 = tpu.memref_squeeze %81 : memref<1x!tpu.dma_semaphore, #tpu.memory_space<semaphore_mem>> -> memref<!tpu.dma_semaphore, #tpu.memory_space<semaphore_mem>>
      tpu.enqueue_dma source(%78 : memref<128xf32, #tpu.memory_space<any>>) target(%80 : memref<128xf32, #tpu.memory_space<vmem>>) target_semaphore(%82 : memref<!tpu.dma_semaphore, #tpu.memory_space<semaphore_mem>>)
    } else {
    }
    %c1_i32 = arith.constant 1 : i32
    %5 = arith.addi %0, %c1_i32 : i32
    %c3_i32_1 = arith.constant 3 : i32
    %6 = arith.cmpi slt, %5, %c3_i32_1 : i32
    %7 = arith.extui %6 : i1 to i32
    %c0_i32_2 = arith.constant 0 : i32
    %8 = arith.cmpi ne, %7, %c0_i32_2 : i32
    scf.if %8 {
      %75 = arith.index_cast %5 : i32 to index
      %76 = memref.load %arg1[%75] : memref<3xi32, #tpu.memory_space<smem>>
      %c1_i32_44 = arith.constant 1 : i32
      %c1_i32_45 = arith.constant 1 : i32
      %c0_i32_46 = arith.constant 0 : i32
      %77 = tpu.memref_slice %arg2[%76, %c0_i32_46] : memref<8x128xf32, #tpu.memory_space<any>> -> memref<1x128xf32, #tpu.memory_space<any>>
      %78 = tpu.memref_squeeze %77 : memref<1x128xf32, #tpu.memory_space<any>> -> memref<128xf32, #tpu.memory_space<any>>
      %c0_i32_47 = arith.constant 0 : i32
      %79 = tpu.memref_slice %arg4[%c1_i32_44, %c0_i32_47] : memref<8x128xf32, #tpu.memory_space<vmem>> -> memref<1x128xf32, #tpu.memory_space<vmem>>
      %80 = tpu.memref_squeeze %79 : memref<1x128xf32, #tpu.memory_space<vmem>> -> memref<128xf32, #tpu.memory_space<vmem>>
      %81 = tpu.memref_slice %arg5[%c1_i32_45] : memref<8x!tpu.dma_semaphore, #tpu.memory_space<semaphore_mem>> -> memref<1x!tpu.dma_semaphore, #tpu.memory_space<semaphore_mem>>
      %82 = tpu.memref_squeeze %81 : memref<1x!tpu.dma_semaphore, #tpu.memory_space<semaphore_mem>> -> memref<!tpu.dma_semaphore, #tpu.memory_space<semaphore_mem>>
      tpu.enqueue_dma source(%78 : memref<128xf32, #tpu.memory_space<any>>) target(%80 : memref<128xf32, #tpu.memory_space<vmem>>) target_semaphore(%82 : memref<!tpu.dma_semaphore, #tpu.memory_space<semaphore_mem>>)
    } else {
    }
    %c2_i32 = arith.constant 2 : i32
    %9 = arith.addi %0, %c2_i32 : i32
    %c3_i32_3 = arith.constant 3 : i32
    %10 = arith.cmpi slt, %9, %c3_i32_3 : i32
    %11 = arith.extui %10 : i1 to i32
    %c0_i32_4 = arith.constant 0 : i32
    %12 = arith.cmpi ne, %11, %c0_i32_4 : i32
    scf.if %12 {
      %75 = arith.index_cast %9 : i32 to index
      %76 = memref.load %arg1[%75] : memref<3xi32, #tpu.memory_space<smem>>
      %c2_i32_44 = arith.constant 2 : i32
      %c2_i32_45 = arith.constant 2 : i32
      %c0_i32_46 = arith.constant 0 : i32
      %77 = tpu.memref_slice %arg2[%76, %c0_i32_46] : memref<8x128xf32, #tpu.memory_space<any>> -> memref<1x128xf32, #tpu.memory_space<any>>
      %78 = tpu.memref_squeeze %77 : memref<1x128xf32, #tpu.memory_space<any>> -> memref<128xf32, #tpu.memory_space<any>>
      %c0_i32_47 = arith.constant 0 : i32
      %79 = tpu.memref_slice %arg4[%c2_i32_44, %c0_i32_47] : memref<8x128xf32, #tpu.memory_space<vmem>> -> memref<1x128xf32, #tpu.memory_space<vmem>>
      %80 = tpu.memref_squeeze %79 : memref<1x128xf32, #tpu.memory_space<vmem>> -> memref<128xf32, #tpu.memory_space<vmem>>
      %81 = tpu.memref_slice %arg5[%c2_i32_45] : memref<8x!tpu.dma_semaphore, #tpu.memory_space<semaphore_mem>> -> memref<1x!tpu.dma_semaphore, #tpu.memory_space<semaphore_mem>>
      %82 = tpu.memref_squeeze %81 : memref<1x!tpu.dma_semaphore, #tpu.memory_space<semaphore_mem>> -> memref<!tpu.dma_semaphore, #tpu.memory_space<semaphore_mem>>
      tpu.enqueue_dma source(%78 : memref<128xf32, #tpu.memory_space<any>>) target(%80 : memref<128xf32, #tpu.memory_space<vmem>>) target_semaphore(%82 : memref<!tpu.dma_semaphore, #tpu.memory_space<semaphore_mem>>)
    } else {
    }
    %c3_i32_5 = arith.constant 3 : i32
    %13 = arith.addi %0, %c3_i32_5 : i32
    %c3_i32_6 = arith.constant 3 : i32
    %14 = arith.cmpi slt, %13, %c3_i32_6 : i32
    %15 = arith.extui %14 : i1 to i32
    %c0_i32_7 = arith.constant 0 : i32
    %16 = arith.cmpi ne, %15, %c0_i32_7 : i32
    scf.if %16 {
      %75 = arith.index_cast %13 : i32 to index
      %76 = memref.load %arg1[%75] : memref<3xi32, #tpu.memory_space<smem>>
      %c3_i32_44 = arith.constant 3 : i32
      %c3_i32_45 = arith.constant 3 : i32
      %c0_i32_46 = arith.constant 0 : i32
      %77 = tpu.memref_slice %arg2[%76, %c0_i32_46] : memref<8x128xf32, #tpu.memory_space<any>> -> memref<1x128xf32, #tpu.memory_space<any>>
      %78 = tpu.memref_squeeze %77 : memref<1x128xf32, #tpu.memory_space<any>> -> memref<128xf32, #tpu.memory_space<any>>
      %c0_i32_47 = arith.constant 0 : i32
      %79 = tpu.memref_slice %arg4[%c3_i32_44, %c0_i32_47] : memref<8x128xf32, #tpu.memory_space<vmem>> -> memref<1x128xf32, #tpu.memory_space<vmem>>
      %80 = tpu.memref_squeeze %79 : memref<1x128xf32, #tpu.memory_space<vmem>> -> memref<128xf32, #tpu.memory_space<vmem>>
      %81 = tpu.memref_slice %arg5[%c3_i32_45] : memref<8x!tpu.dma_semaphore, #tpu.memory_space<semaphore_mem>> -> memref<1x!tpu.dma_semaphore, #tpu.memory_space<semaphore_mem>>
      %82 = tpu.memref_squeeze %81 : memref<1x!tpu.dma_semaphore, #tpu.memory_space<semaphore_mem>> -> memref<!tpu.dma_semaphore, #tpu.memory_space<semaphore_mem>>
      tpu.enqueue_dma source(%78 : memref<128xf32, #tpu.memory_space<any>>) target(%80 : memref<128xf32, #tpu.memory_space<vmem>>) target_semaphore(%82 : memref<!tpu.dma_semaphore, #tpu.memory_space<semaphore_mem>>)
    } else {
    }
    %c4_i32 = arith.constant 4 : i32
    %17 = arith.addi %0, %c4_i32 : i32
    %c3_i32_8 = arith.constant 3 : i32
    %18 = arith.cmpi slt, %17, %c3_i32_8 : i32
    %19 = arith.extui %18 : i1 to i32
    %c0_i32_9 = arith.constant 0 : i32
    %20 = arith.cmpi ne, %19, %c0_i32_9 : i32
    scf.if %20 {
      %75 = arith.index_cast %17 : i32 to index
      %76 = memref.load %arg1[%75] : memref<3xi32, #tpu.memory_space<smem>>
      %c4_i32_44 = arith.constant 4 : i32
      %c4_i32_45 = arith.constant 4 : i32
      %c0_i32_46 = arith.constant 0 : i32
      %77 = tpu.memref_slice %arg2[%76, %c0_i32_46] : memref<8x128xf32, #tpu.memory_space<any>> -> memref<1x128xf32, #tpu.memory_space<any>>
      %78 = tpu.memref_squeeze %77 : memref<1x128xf32, #tpu.memory_space<any>> -> memref<128xf32, #tpu.memory_space<any>>
      %c0_i32_47 = arith.constant 0 : i32
      %79 = tpu.memref_slice %arg4[%c4_i32_44, %c0_i32_47] : memref<8x128xf32, #tpu.memory_space<vmem>> -> memref<1x128xf32, #tpu.memory_space<vmem>>
      %80 = tpu.memref_squeeze %79 : memref<1x128xf32, #tpu.memory_space<vmem>> -> memref<128xf32, #tpu.memory_space<vmem>>
      %81 = tpu.memref_slice %arg5[%c4_i32_45] : memref<8x!tpu.dma_semaphore, #tpu.memory_space<semaphore_mem>> -> memref<1x!tpu.dma_semaphore, #tpu.memory_space<semaphore_mem>>
      %82 = tpu.memref_squeeze %81 : memref<1x!tpu.dma_semaphore, #tpu.memory_space<semaphore_mem>> -> memref<!tpu.dma_semaphore, #tpu.memory_space<semaphore_mem>>
      tpu.enqueue_dma source(%78 : memref<128xf32, #tpu.memory_space<any>>) target(%80 : memref<128xf32, #tpu.memory_space<vmem>>) target_semaphore(%82 : memref<!tpu.dma_semaphore, #tpu.memory_space<semaphore_mem>>)
    } else {
    }
    %c5_i32 = arith.constant 5 : i32
    %21 = arith.addi %0, %c5_i32 : i32
    %c3_i32_10 = arith.constant 3 : i32
    %22 = arith.cmpi slt, %21, %c3_i32_10 : i32
    %23 = arith.extui %22 : i1 to i32
    %c0_i32_11 = arith.constant 0 : i32
    %24 = arith.cmpi ne, %23, %c0_i32_11 : i32
    scf.if %24 {
      %75 = arith.index_cast %21 : i32 to index
      %76 = memref.load %arg1[%75] : memref<3xi32, #tpu.memory_space<smem>>
      %c5_i32_44 = arith.constant 5 : i32
      %c5_i32_45 = arith.constant 5 : i32
      %c0_i32_46 = arith.constant 0 : i32
      %77 = tpu.memref_slice %arg2[%76, %c0_i32_46] : memref<8x128xf32, #tpu.memory_space<any>> -> memref<1x128xf32, #tpu.memory_space<any>>
      %78 = tpu.memref_squeeze %77 : memref<1x128xf32, #tpu.memory_space<any>> -> memref<128xf32, #tpu.memory_space<any>>
      %c0_i32_47 = arith.constant 0 : i32
      %79 = tpu.memref_slice %arg4[%c5_i32_44, %c0_i32_47] : memref<8x128xf32, #tpu.memory_space<vmem>> -> memref<1x128xf32, #tpu.memory_space<vmem>>
      %80 = tpu.memref_squeeze %79 : memref<1x128xf32, #tpu.memory_space<vmem>> -> memref<128xf32, #tpu.memory_space<vmem>>
      %81 = tpu.memref_slice %arg5[%c5_i32_45] : memref<8x!tpu.dma_semaphore, #tpu.memory_space<semaphore_mem>> -> memref<1x!tpu.dma_semaphore, #tpu.memory_space<semaphore_mem>>
      %82 = tpu.memref_squeeze %81 : memref<1x!tpu.dma_semaphore, #tpu.memory_space<semaphore_mem>> -> memref<!tpu.dma_semaphore, #tpu.memory_space<semaphore_mem>>
      tpu.enqueue_dma source(%78 : memref<128xf32, #tpu.memory_space<any>>) target(%80 : memref<128xf32, #tpu.memory_space<vmem>>) target_semaphore(%82 : memref<!tpu.dma_semaphore, #tpu.memory_space<semaphore_mem>>)
    } else {
    }
    %c6_i32 = arith.constant 6 : i32
    %25 = arith.addi %0, %c6_i32 : i32
    %c3_i32_12 = arith.constant 3 : i32
    %26 = arith.cmpi slt, %25, %c3_i32_12 : i32
    %27 = arith.extui %26 : i1 to i32
    %c0_i32_13 = arith.constant 0 : i32
    %28 = arith.cmpi ne, %27, %c0_i32_13 : i32
    scf.if %28 {
      %75 = arith.index_cast %25 : i32 to index
      %76 = memref.load %arg1[%75] : memref<3xi32, #tpu.memory_space<smem>>
      %c6_i32_44 = arith.constant 6 : i32
      %c6_i32_45 = arith.constant 6 : i32
      %c0_i32_46 = arith.constant 0 : i32
      %77 = tpu.memref_slice %arg2[%76, %c0_i32_46] : memref<8x128xf32, #tpu.memory_space<any>> -> memref<1x128xf32, #tpu.memory_space<any>>
      %78 = tpu.memref_squeeze %77 : memref<1x128xf32, #tpu.memory_space<any>> -> memref<128xf32, #tpu.memory_space<any>>
      %c0_i32_47 = arith.constant 0 : i32
      %79 = tpu.memref_slice %arg4[%c6_i32_44, %c0_i32_47] : memref<8x128xf32, #tpu.memory_space<vmem>> -> memref<1x128xf32, #tpu.memory_space<vmem>>
      %80 = tpu.memref_squeeze %79 : memref<1x128xf32, #tpu.memory_space<vmem>> -> memref<128xf32, #tpu.memory_space<vmem>>
      %81 = tpu.memref_slice %arg5[%c6_i32_45] : memref<8x!tpu.dma_semaphore, #tpu.memory_space<semaphore_mem>> -> memref<1x!tpu.dma_semaphore, #tpu.memory_space<semaphore_mem>>
      %82 = tpu.memref_squeeze %81 : memref<1x!tpu.dma_semaphore, #tpu.memory_space<semaphore_mem>> -> memref<!tpu.dma_semaphore, #tpu.memory_space<semaphore_mem>>
      tpu.enqueue_dma source(%78 : memref<128xf32, #tpu.memory_space<any>>) target(%80 : memref<128xf32, #tpu.memory_space<vmem>>) target_semaphore(%82 : memref<!tpu.dma_semaphore, #tpu.memory_space<semaphore_mem>>)
    } else {
    }
    %c7_i32 = arith.constant 7 : i32
    %29 = arith.addi %0, %c7_i32 : i32
    %c3_i32_14 = arith.constant 3 : i32
    %30 = arith.cmpi slt, %29, %c3_i32_14 : i32
    %31 = arith.extui %30 : i1 to i32
    %c0_i32_15 = arith.constant 0 : i32
    %32 = arith.cmpi ne, %31, %c0_i32_15 : i32
    scf.if %32 {
      %75 = arith.index_cast %29 : i32 to index
      %76 = memref.load %arg1[%75] : memref<3xi32, #tpu.memory_space<smem>>
      %c7_i32_44 = arith.constant 7 : i32
      %c7_i32_45 = arith.constant 7 : i32
      %c0_i32_46 = arith.constant 0 : i32
      %77 = tpu.memref_slice %arg2[%76, %c0_i32_46] : memref<8x128xf32, #tpu.memory_space<any>> -> memref<1x128xf32, #tpu.memory_space<any>>
      %78 = tpu.memref_squeeze %77 : memref<1x128xf32, #tpu.memory_space<any>> -> memref<128xf32, #tpu.memory_space<any>>
      %c0_i32_47 = arith.constant 0 : i32
      %79 = tpu.memref_slice %arg4[%c7_i32_44, %c0_i32_47] : memref<8x128xf32, #tpu.memory_space<vmem>> -> memref<1x128xf32, #tpu.memory_space<vmem>>
      %80 = tpu.memref_squeeze %79 : memref<1x128xf32, #tpu.memory_space<vmem>> -> memref<128xf32, #tpu.memory_space<vmem>>
      %81 = tpu.memref_slice %arg5[%c7_i32_45] : memref<8x!tpu.dma_semaphore, #tpu.memory_space<semaphore_mem>> -> memref<1x!tpu.dma_semaphore, #tpu.memory_space<semaphore_mem>>
      %82 = tpu.memref_squeeze %81 : memref<1x!tpu.dma_semaphore, #tpu.memory_space<semaphore_mem>> -> memref<!tpu.dma_semaphore, #tpu.memory_space<semaphore_mem>>
      tpu.enqueue_dma source(%78 : memref<128xf32, #tpu.memory_space<any>>) target(%80 : memref<128xf32, #tpu.memory_space<vmem>>) target_semaphore(%82 : memref<!tpu.dma_semaphore, #tpu.memory_space<semaphore_mem>>)
    } else {
    }
    %c0_i32_16 = arith.constant 0 : i32
    %33 = arith.addi %0, %c0_i32_16 : i32
    %c3_i32_17 = arith.constant 3 : i32
    %34 = arith.cmpi slt, %33, %c3_i32_17 : i32
    %35 = arith.extui %34 : i1 to i32
    %c0_i32_18 = arith.constant 0 : i32
    %36 = arith.cmpi ne, %35, %c0_i32_18 : i32
    scf.if %36 {
      %75 = arith.index_cast %33 : i32 to index
      %76 = memref.load %arg1[%75] : memref<3xi32, #tpu.memory_space<smem>>
      %c0_i32_44 = arith.constant 0 : i32
      %c0_i32_45 = arith.constant 0 : i32
      %c0_i32_46 = arith.constant 0 : i32
      %77 = tpu.memref_slice %arg2[%76, %c0_i32_46] : memref<8x128xf32, #tpu.memory_space<any>> -> memref<1x128xf32, #tpu.memory_space<any>>
      %78 = tpu.memref_squeeze %77 : memref<1x128xf32, #tpu.memory_space<any>> -> memref<128xf32, #tpu.memory_space<any>>
      %c0_i32_47 = arith.constant 0 : i32
      %79 = tpu.memref_slice %arg4[%c0_i32_44, %c0_i32_47] : memref<8x128xf32, #tpu.memory_space<vmem>> -> memref<1x128xf32, #tpu.memory_space<vmem>>
      %80 = tpu.memref_squeeze %79 : memref<1x128xf32, #tpu.memory_space<vmem>> -> memref<128xf32, #tpu.memory_space<vmem>>
      %81 = tpu.memref_slice %arg5[%c0_i32_45] : memref<8x!tpu.dma_semaphore, #tpu.memory_space<semaphore_mem>> -> memref<1x!tpu.dma_semaphore, #tpu.memory_space<semaphore_mem>>
      %82 = tpu.memref_squeeze %81 : memref<1x!tpu.dma_semaphore, #tpu.memory_space<semaphore_mem>> -> memref<!tpu.dma_semaphore, #tpu.memory_space<semaphore_mem>>
      tpu.wait_dma2 semaphore(%82 : memref<!tpu.dma_semaphore, #tpu.memory_space<semaphore_mem>>) src(%78 : memref<128xf32, #tpu.memory_space<any>>) dst(%80 : memref<128xf32, #tpu.memory_space<vmem>>)
    } else {
    }
    %c1_i32_19 = arith.constant 1 : i32
    %37 = arith.addi %0, %c1_i32_19 : i32
    %c3_i32_20 = arith.constant 3 : i32
    %38 = arith.cmpi slt, %37, %c3_i32_20 : i32
    %39 = arith.extui %38 : i1 to i32
    %c0_i32_21 = arith.constant 0 : i32
    %40 = arith.cmpi ne, %39, %c0_i32_21 : i32
    scf.if %40 {
      %75 = arith.index_cast %37 : i32 to index
      %76 = memref.load %arg1[%75] : memref<3xi32, #tpu.memory_space<smem>>
      %c1_i32_44 = arith.constant 1 : i32
      %c1_i32_45 = arith.constant 1 : i32
      %c0_i32_46 = arith.constant 0 : i32
      %77 = tpu.memref_slice %arg2[%76, %c0_i32_46] : memref<8x128xf32, #tpu.memory_space<any>> -> memref<1x128xf32, #tpu.memory_space<any>>
      %78 = tpu.memref_squeeze %77 : memref<1x128xf32, #tpu.memory_space<any>> -> memref<128xf32, #tpu.memory_space<any>>
      %c0_i32_47 = arith.constant 0 : i32
      %79 = tpu.memref_slice %arg4[%c1_i32_44, %c0_i32_47] : memref<8x128xf32, #tpu.memory_space<vmem>> -> memref<1x128xf32, #tpu.memory_space<vmem>>
      %80 = tpu.memref_squeeze %79 : memref<1x128xf32, #tpu.memory_space<vmem>> -> memref<128xf32, #tpu.memory_space<vmem>>
      %81 = tpu.memref_slice %arg5[%c1_i32_45] : memref<8x!tpu.dma_semaphore, #tpu.memory_space<semaphore_mem>> -> memref<1x!tpu.dma_semaphore, #tpu.memory_space<semaphore_mem>>
      %82 = tpu.memref_squeeze %81 : memref<1x!tpu.dma_semaphore, #tpu.memory_space<semaphore_mem>> -> memref<!tpu.dma_semaphore, #tpu.memory_space<semaphore_mem>>
      tpu.wait_dma2 semaphore(%82 : memref<!tpu.dma_semaphore, #tpu.memory_space<semaphore_mem>>) src(%78 : memref<128xf32, #tpu.memory_space<any>>) dst(%80 : memref<128xf32, #tpu.memory_space<vmem>>)
    } else {
    }
    %c2_i32_22 = arith.constant 2 : i32
    %41 = arith.addi %0, %c2_i32_22 : i32
    %c3_i32_23 = arith.constant 3 : i32
    %42 = arith.cmpi slt, %41, %c3_i32_23 : i32
    %43 = arith.extui %42 : i1 to i32
    %c0_i32_24 = arith.constant 0 : i32
    %44 = arith.cmpi ne, %43, %c0_i32_24 : i32
    scf.if %44 {
      %75 = arith.index_cast %41 : i32 to index
      %76 = memref.load %arg1[%75] : memref<3xi32, #tpu.memory_space<smem>>
      %c2_i32_44 = arith.constant 2 : i32
      %c2_i32_45 = arith.constant 2 : i32
      %c0_i32_46 = arith.constant 0 : i32
      %77 = tpu.memref_slice %arg2[%76, %c0_i32_46] : memref<8x128xf32, #tpu.memory_space<any>> -> memref<1x128xf32, #tpu.memory_space<any>>
      %78 = tpu.memref_squeeze %77 : memref<1x128xf32, #tpu.memory_space<any>> -> memref<128xf32, #tpu.memory_space<any>>
      %c0_i32_47 = arith.constant 0 : i32
      %79 = tpu.memref_slice %arg4[%c2_i32_44, %c0_i32_47] : memref<8x128xf32, #tpu.memory_space<vmem>> -> memref<1x128xf32, #tpu.memory_space<vmem>>
      %80 = tpu.memref_squeeze %79 : memref<1x128xf32, #tpu.memory_space<vmem>> -> memref<128xf32, #tpu.memory_space<vmem>>
      %81 = tpu.memref_slice %arg5[%c2_i32_45] : memref<8x!tpu.dma_semaphore, #tpu.memory_space<semaphore_mem>> -> memref<1x!tpu.dma_semaphore, #tpu.memory_space<semaphore_mem>>
      %82 = tpu.memref_squeeze %81 : memref<1x!tpu.dma_semaphore, #tpu.memory_space<semaphore_mem>> -> memref<!tpu.dma_semaphore, #tpu.memory_space<semaphore_mem>>
      tpu.wait_dma2 semaphore(%82 : memref<!tpu.dma_semaphore, #tpu.memory_space<semaphore_mem>>) src(%78 : memref<128xf32, #tpu.memory_space<any>>) dst(%80 : memref<128xf32, #tpu.memory_space<vmem>>)
    } else {
    }
    %c3_i32_25 = arith.constant 3 : i32
    %45 = arith.addi %0, %c3_i32_25 : i32
    %c3_i32_26 = arith.constant 3 : i32
    %46 = arith.cmpi slt, %45, %c3_i32_26 : i32
    %47 = arith.extui %46 : i1 to i32
    %c0_i32_27 = arith.constant 0 : i32
    %48 = arith.cmpi ne, %47, %c0_i32_27 : i32
    scf.if %48 {
      %75 = arith.index_cast %45 : i32 to index
      %76 = memref.load %arg1[%75] : memref<3xi32, #tpu.memory_space<smem>>
      %c3_i32_44 = arith.constant 3 : i32
      %c3_i32_45 = arith.constant 3 : i32
      %c0_i32_46 = arith.constant 0 : i32
      %77 = tpu.memref_slice %arg2[%76, %c0_i32_46] : memref<8x128xf32, #tpu.memory_space<any>> -> memref<1x128xf32, #tpu.memory_space<any>>
      %78 = tpu.memref_squeeze %77 : memref<1x128xf32, #tpu.memory_space<any>> -> memref<128xf32, #tpu.memory_space<any>>
      %c0_i32_47 = arith.constant 0 : i32
      %79 = tpu.memref_slice %arg4[%c3_i32_44, %c0_i32_47] : memref<8x128xf32, #tpu.memory_space<vmem>> -> memref<1x128xf32, #tpu.memory_space<vmem>>
      %80 = tpu.memref_squeeze %79 : memref<1x128xf32, #tpu.memory_space<vmem>> -> memref<128xf32, #tpu.memory_space<vmem>>
      %81 = tpu.memref_slice %arg5[%c3_i32_45] : memref<8x!tpu.dma_semaphore, #tpu.memory_space<semaphore_mem>> -> memref<1x!tpu.dma_semaphore, #tpu.memory_space<semaphore_mem>>
      %82 = tpu.memref_squeeze %81 : memref<1x!tpu.dma_semaphore, #tpu.memory_space<semaphore_mem>> -> memref<!tpu.dma_semaphore, #tpu.memory_space<semaphore_mem>>
      tpu.wait_dma2 semaphore(%82 : memref<!tpu.dma_semaphore, #tpu.memory_space<semaphore_mem>>) src(%78 : memref<128xf32, #tpu.memory_space<any>>) dst(%80 : memref<128xf32, #tpu.memory_space<vmem>>)
    } else {
    }
    %c4_i32_28 = arith.constant 4 : i32
    %49 = arith.addi %0, %c4_i32_28 : i32
    %c3_i32_29 = arith.constant 3 : i32
    %50 = arith.cmpi slt, %49, %c3_i32_29 : i32
    %51 = arith.extui %50 : i1 to i32
    %c0_i32_30 = arith.constant 0 : i32
    %52 = arith.cmpi ne, %51, %c0_i32_30 : i32
    scf.if %52 {
      %75 = arith.index_cast %49 : i32 to index
      %76 = memref.load %arg1[%75] : memref<3xi32, #tpu.memory_space<smem>>
      %c4_i32_44 = arith.constant 4 : i32
      %c4_i32_45 = arith.constant 4 : i32
      %c0_i32_46 = arith.constant 0 : i32
      %77 = tpu.memref_slice %arg2[%76, %c0_i32_46] : memref<8x128xf32, #tpu.memory_space<any>> -> memref<1x128xf32, #tpu.memory_space<any>>
      %78 = tpu.memref_squeeze %77 : memref<1x128xf32, #tpu.memory_space<any>> -> memref<128xf32, #tpu.memory_space<any>>
      %c0_i32_47 = arith.constant 0 : i32
      %79 = tpu.memref_slice %arg4[%c4_i32_44, %c0_i32_47] : memref<8x128xf32, #tpu.memory_space<vmem>> -> memref<1x128xf32, #tpu.memory_space<vmem>>
      %80 = tpu.memref_squeeze %79 : memref<1x128xf32, #tpu.memory_space<vmem>> -> memref<128xf32, #tpu.memory_space<vmem>>
      %81 = tpu.memref_slice %arg5[%c4_i32_45] : memref<8x!tpu.dma_semaphore, #tpu.memory_space<semaphore_mem>> -> memref<1x!tpu.dma_semaphore, #tpu.memory_space<semaphore_mem>>
      %82 = tpu.memref_squeeze %81 : memref<1x!tpu.dma_semaphore, #tpu.memory_space<semaphore_mem>> -> memref<!tpu.dma_semaphore, #tpu.memory_space<semaphore_mem>>
      tpu.wait_dma2 semaphore(%82 : memref<!tpu.dma_semaphore, #tpu.memory_space<semaphore_mem>>) src(%78 : memref<128xf32, #tpu.memory_space<any>>) dst(%80 : memref<128xf32, #tpu.memory_space<vmem>>)
    } else {
    }
    %c5_i32_31 = arith.constant 5 : i32
    %53 = arith.addi %0, %c5_i32_31 : i32
    %c3_i32_32 = arith.constant 3 : i32
    %54 = arith.cmpi slt, %53, %c3_i32_32 : i32
    %55 = arith.extui %54 : i1 to i32
    %c0_i32_33 = arith.constant 0 : i32
    %56 = arith.cmpi ne, %55, %c0_i32_33 : i32
    scf.if %56 {
      %75 = arith.index_cast %53 : i32 to index
      %76 = memref.load %arg1[%75] : memref<3xi32, #tpu.memory_space<smem>>
      %c5_i32_44 = arith.constant 5 : i32
      %c5_i32_45 = arith.constant 5 : i32
      %c0_i32_46 = arith.constant 0 : i32
      %77 = tpu.memref_slice %arg2[%76, %c0_i32_46] : memref<8x128xf32, #tpu.memory_space<any>> -> memref<1x128xf32, #tpu.memory_space<any>>
      %78 = tpu.memref_squeeze %77 : memref<1x128xf32, #tpu.memory_space<any>> -> memref<128xf32, #tpu.memory_space<any>>
      %c0_i32_47 = arith.constant 0 : i32
      %79 = tpu.memref_slice %arg4[%c5_i32_44, %c0_i32_47] : memref<8x128xf32, #tpu.memory_space<vmem>> -> memref<1x128xf32, #tpu.memory_space<vmem>>
      %80 = tpu.memref_squeeze %79 : memref<1x128xf32, #tpu.memory_space<vmem>> -> memref<128xf32, #tpu.memory_space<vmem>>
      %81 = tpu.memref_slice %arg5[%c5_i32_45] : memref<8x!tpu.dma_semaphore, #tpu.memory_space<semaphore_mem>> -> memref<1x!tpu.dma_semaphore, #tpu.memory_space<semaphore_mem>>
      %82 = tpu.memref_squeeze %81 : memref<1x!tpu.dma_semaphore, #tpu.memory_space<semaphore_mem>> -> memref<!tpu.dma_semaphore, #tpu.memory_space<semaphore_mem>>
      tpu.wait_dma2 semaphore(%82 : memref<!tpu.dma_semaphore, #tpu.memory_space<semaphore_mem>>) src(%78 : memref<128xf32, #tpu.memory_space<any>>) dst(%80 : memref<128xf32, #tpu.memory_space<vmem>>)
    } else {
    }
    %c6_i32_34 = arith.constant 6 : i32
    %57 = arith.addi %0, %c6_i32_34 : i32
    %c3_i32_35 = arith.constant 3 : i32
    %58 = arith.cmpi slt, %57, %c3_i32_35 : i32
    %59 = arith.extui %58 : i1 to i32
    %c0_i32_36 = arith.constant 0 : i32
    %60 = arith.cmpi ne, %59, %c0_i32_36 : i32
    scf.if %60 {
      %75 = arith.index_cast %57 : i32 to index
      %76 = memref.load %arg1[%75] : memref<3xi32, #tpu.memory_space<smem>>
      %c6_i32_44 = arith.constant 6 : i32
      %c6_i32_45 = arith.constant 6 : i32
      %c0_i32_46 = arith.constant 0 : i32
      %77 = tpu.memref_slice %arg2[%76, %c0_i32_46] : memref<8x128xf32, #tpu.memory_space<any>> -> memref<1x128xf32, #tpu.memory_space<any>>
      %78 = tpu.memref_squeeze %77 : memref<1x128xf32, #tpu.memory_space<any>> -> memref<128xf32, #tpu.memory_space<any>>
      %c0_i32_47 = arith.constant 0 : i32
      %79 = tpu.memref_slice %arg4[%c6_i32_44, %c0_i32_47] : memref<8x128xf32, #tpu.memory_space<vmem>> -> memref<1x128xf32, #tpu.memory_space<vmem>>
      %80 = tpu.memref_squeeze %79 : memref<1x128xf32, #tpu.memory_space<vmem>> -> memref<128xf32, #tpu.memory_space<vmem>>
      %81 = tpu.memref_slice %arg5[%c6_i32_45] : memref<8x!tpu.dma_semaphore, #tpu.memory_space<semaphore_mem>> -> memref<1x!tpu.dma_semaphore, #tpu.memory_space<semaphore_mem>>
      %82 = tpu.memref_squeeze %81 : memref<1x!tpu.dma_semaphore, #tpu.memory_space<semaphore_mem>> -> memref<!tpu.dma_semaphore, #tpu.memory_space<semaphore_mem>>
      tpu.wait_dma2 semaphore(%82 : memref<!tpu.dma_semaphore, #tpu.memory_space<semaphore_mem>>) src(%78 : memref<128xf32, #tpu.memory_space<any>>) dst(%80 : memref<128xf32, #tpu.memory_space<vmem>>)
    } else {
    }
    %c7_i32_37 = arith.constant 7 : i32
    %61 = arith.addi %0, %c7_i32_37 : i32
    %c3_i32_38 = arith.constant 3 : i32
    %62 = arith.cmpi slt, %61, %c3_i32_38 : i32
    %63 = arith.extui %62 : i1 to i32
    %c0_i32_39 = arith.constant 0 : i32
    %64 = arith.cmpi ne, %63, %c0_i32_39 : i32
    scf.if %64 {
      %75 = arith.index_cast %61 : i32 to index
      %76 = memref.load %arg1[%75] : memref<3xi32, #tpu.memory_space<smem>>
      %c7_i32_44 = arith.constant 7 : i32
      %c7_i32_45 = arith.constant 7 : i32
      %c0_i32_46 = arith.constant 0 : i32
      %77 = tpu.memref_slice %arg2[%76, %c0_i32_46] : memref<8x128xf32, #tpu.memory_space<any>> -> memref<1x128xf32, #tpu.memory_space<any>>
      %78 = tpu.memref_squeeze %77 : memref<1x128xf32, #tpu.memory_space<any>> -> memref<128xf32, #tpu.memory_space<any>>
      %c0_i32_47 = arith.constant 0 : i32
      %79 = tpu.memref_slice %arg4[%c7_i32_44, %c0_i32_47] : memref<8x128xf32, #tpu.memory_space<vmem>> -> memref<1x128xf32, #tpu.memory_space<vmem>>
      %80 = tpu.memref_squeeze %79 : memref<1x128xf32, #tpu.memory_space<vmem>> -> memref<128xf32, #tpu.memory_space<vmem>>
      %81 = tpu.memref_slice %arg5[%c7_i32_45] : memref<8x!tpu.dma_semaphore, #tpu.memory_space<semaphore_mem>> -> memref<1x!tpu.dma_semaphore, #tpu.memory_space<semaphore_mem>>
      %82 = tpu.memref_squeeze %81 : memref<1x!tpu.dma_semaphore, #tpu.memory_space<semaphore_mem>> -> memref<!tpu.dma_semaphore, #tpu.memory_space<semaphore_mem>>
      tpu.wait_dma2 semaphore(%82 : memref<!tpu.dma_semaphore, #tpu.memory_space<semaphore_mem>>) src(%78 : memref<128xf32, #tpu.memory_space<any>>) dst(%80 : memref<128xf32, #tpu.memory_space<vmem>>)
    } else {
    }
    %c0 = arith.constant 0 : index
    %c0_40 = arith.constant 0 : index
    %65 = vector.load %arg4[%c0, %c0_40] : memref<8x128xf32, #tpu.memory_space<vmem>>, vector<8x128xf32>
    %66 = arith.mulf %65, %65 : vector<8x128xf32>
    %cst = arith.constant dense<0.000000e+00> : vector<8xf32>
    %67 = vector.multi_reduction <add>, %66, %cst [1] : vector<8x128xf32> to vector<8xf32>
    %68 = vector.shape_cast %67 : vector<8xf32> to vector<8x1xf32>
    %cst_41 = arith.constant 1.000000e-24 : f32
    %69 = vector.broadcast %cst_41 : f32 to vector<8x1xf32>
    %70 = arith.maximumf %68, %69 : vector<8x1xf32>
    %71 = math.rsqrt %70 : vector<8x1xf32>
    %72 = vector.broadcast %71 : vector<8x1xf32> to vector<8x128xf32>
    %73 = arith.mulf %65, %72 : vector<8x128xf32>
    %c0_42 = arith.constant 0 : index
    %c0_43 = arith.constant 0 : index
    %74 = vector.load %arg3[%c0_42, %c0_43] : memref<8x128xf32, #tpu.memory_space<vmem>>, vector<8x128xf32>
    tpu.vector_store %arg3[%c0_42, %c0_43], %73 {strides = array<i32>} : memref<8x128xf32, #tpu.memory_space<vmem>>, vector<8x128xf32>,
    return
  }
  func.func @transform_1(%arg0: i32, %arg1: memref<3xi32, #tpu.memory_space<smem>>) -> (i32, i32) {
    %c0_i32 = arith.constant 0 : i32
    %c0_i32_0 = arith.constant 0 : i32
    return %arg0, %c0_i32 : i32, i32
  }
}

</mosaic_0001>

<bundles_post_ra>
// kernel: tpu_custom_call.1
= control target key start
LH: loop header
LB: loop body
LE: loop exit
PB: predicated region body
PF: predicated region fallthrough
CT: control target
= control target key end

     0   :  { %s573_s0 = inlined_call_operand.hbm [shape: s32[3], index: 0, kind: input, shape index: {}]   ;;  %s574_s1 = inlined_call_operand.hbm [shape: f32[8,128], index: 1, kind: input, shape index: {}]   ;;  %s575_s2 = inlined_call_operand.hbm [shape: f32[8,128], index: 2, kind: output, shape index: {}]  }
   0x1   :  { %s356_s11 = scalar_lea.hbm %s573_s0, 16 }
   0x2   :  { %p357_p0 = scmp.ne.s32.totalorder %s573_s0, %s356_s11  ;;  %p360_p1 = scmp.lt.u32.totalorder %s356_s11, %s573_s0 }
   0x4   :  { %p362_p2 = pnand %p360_p1, %p357_p0 }
   0x6   :  { %365 = shalt.err (!%p362_p2)  }
   0x7   :  { %s470_s16 = smov [#allocation5]  }
   0x8   :  { %8 = dma.hbm_to_smem %s573_s0, 16, %s470_s16, [#allocation4] }
   0x9   :  { %460 = dma.done.wait [#allocation4], 16 }
   0xa   :  { %461 = vsyncadd [#allocation4], 4294967280 }
   0xb   :  { %10 = sfence }
   0xc   :  { %11 = vsyncpa [#allocation7], 0  ;;  %s17_s19 = sld [smem:[#allocation5]]  ;;  %s471_s20 = smov [#allocation2]  }
   0xd   :  { %s27_s21 = sshll.u32 %s471_s20, 4  ;;  %s502_s22 = sld [smem:[#allocation5 + $0x1]]  ;;  %s506_s21 = int_to_ptr.vmem [resolvable:$true] %s27_s21 }
   0xe   :  { %s472_s23 = smov [#allocation2 + $0x1]   ;;  %s504_s25 = sld [smem:[#allocation5 + $0x2]] }
   0xf   :  { %s48_s24 = sshll.u32 %s472_s23, 4  ;;  %s473_s26 = smov [#allocation2 + $0x2]   ;;  %s508_s24 = int_to_ptr.vmem [resolvable:$true] %s48_s24 }
  0x10   :  { %s69_s0 = sshll.u32 %s473_s26, 4  ;;  %s519_s7 = scalar_lea.hbm %s574_s1, 128  ;;  %s510_s0 = int_to_ptr.vmem [resolvable:$true] %s69_s0 }
  0x12   :  { %s326_s27 = sshll.u32 %s17_s19, 4 }
  0x13   :  { %s19_s30 = scalar_lea.hbm %s574_s1, %s326_s27  ;;  %s328_s3 = sshll.u32 %s502_s22, 4 }
  0x14   :  { %s366_s4 = scalar_lea.hbm %s19_s30, 16  ;;  %p369_p4 = scmp.lt.u32.totalorder %s19_s30, %s574_s1 }
  0x15   :  { %p367_p3 = scmp.ne.s32.totalorder %s19_s30, %s366_s4  ;;  %p370_p5 = scmp.lt.u32.totalorder %s519_s7, %s366_s4 }
  0x16   :  { %p372_p7 = scmp.lt.u32.totalorder %s366_s4, %s19_s30 }
  0x17   :  { %p371_p6 = por %p370_p5, %p369_p4 }
  0x19   :  { %p373_p8 = por %p372_p7, %p371_p6 }
  0x1b   :  { %p374_p9 = pnand %p373_p8, %p367_p3 }
  0x1d   :  { %377 = shalt.err (!%p374_p9)  }
  0x1e   :  { %s378_s10 = scalar_lea.vmem %s506_s21, 16  ;;  %s528_s11 = scalar_lea.vmem %s506_s21, 128 }
  0x1f   :  { %p379_p10 = scmp.ne.s32.totalorder %s506_s21, %s378_s10  ;;  %p383_p11 = scmp.lt.s32.totalorder %s506_s21, %s506_s21 }
  0x20   :  { %p384_p12 = scmp.lt.s32.totalorder %s528_s11, %s378_s10 }
  0x22   :  { %p385_p13 = por %p384_p12, %p383_p11 }
  0x24   :  { %p386_p0 = pnand %p385_p13, %p379_p10 }
  0x26   :  { %389 = shalt.err (!%p386_p0)  }
  0x27   :  { %30 = dma.hbm_to_vmem [thread:$0]  %s19_s30, 16, %s506_s21, [#allocation3] }
  0x28   :  { %s38_s14 = scalar_lea.hbm %s574_s1, %s328_s3  ;;  %s330_s15 = sshll.u32 %s504_s25, 4 }
  0x29   :  { %s390_s16 = scalar_lea.hbm %s38_s14, 16  ;;  %p393_p2 = scmp.lt.u32.totalorder %s38_s14, %s574_s1 }
  0x2a   :  { %p391_p1 = scmp.ne.s32.totalorder %s38_s14, %s390_s16  ;;  %p394_p3 = scmp.lt.u32.totalorder %s519_s7, %s390_s16 }
  0x2b   :  { %p396_p5 = scmp.lt.u32.totalorder %s390_s16, %s38_s14 }
  0x2c   :  { %p395_p4 = por %p394_p3, %p393_p2 }
  0x2e   :  { %p397_p6 = por %p396_p5, %p395_p4 }
  0x30   :  { %p398_p7 = pnand %p397_p6, %p391_p1 }
  0x32   :  { %401 = shalt.err (!%p398_p7)  }
  0x33   :  { %s402_s19 = scalar_lea.vmem %s508_s24, 16  ;;  %p407_p9 = scmp.lt.s32.totalorder %s508_s24, %s506_s21 }
  0x34   :  { %p403_p8 = scmp.ne.s32.totalorder %s508_s24, %s402_s19  ;;  %p408_p10 = scmp.lt.s32.totalorder %s528_s11, %s402_s19 }
  0x36   :  { %p409_p11 = por %p408_p10, %p407_p9 }
  0x38   :  { %p410_p12 = pnand %p409_p11, %p403_p8 }
  0x3a   :  { %413 = shalt.err (!%p410_p12)  }
  0x3b   :  { %51 = dma.hbm_to_vmem [thread:$0]  %s38_s14, 16, %s508_s24, [#allocation3 + $0x1] }
  0x3c   :  { %s59_s23 = scalar_lea.hbm %s574_s1, %s330_s15 }
  0x3d   :  { %s414_s25 = scalar_lea.hbm %s59_s23, 16  ;;  %p417_p0 = scmp.lt.u32.totalorder %s59_s23, %s574_s1 }
  0x3e   :  { %p415_p13 = scmp.ne.s32.totalorder %s59_s23, %s414_s25  ;;  %p418_p1 = scmp.lt.u32.totalorder %s519_s7, %s414_s25 }
  0x3f   :  { %p420_p3 = scmp.lt.u32.totalorder %s414_s25, %s59_s23 }
  0x40   :  { %p419_p2 = por %p418_p1, %p417_p0 }
  0x42   :  { %p421_p4 = por %p420_p3, %p419_p2 }
  0x44   :  { %p422_p5 = pnand %p421_p4, %p415_p13 }
  0x46   :  { %425 = shalt.err (!%p422_p5)  }
  0x47   :  { %s426_s24 = scalar_lea.vmem %s510_s0, 16  ;;  %p431_p7 = scmp.lt.s32.totalorder %s510_s0, %s506_s21 }
  0x48   :  { %p427_p6 = scmp.ne.s32.totalorder %s510_s0, %s426_s24  ;;  %p432_p8 = scmp.lt.s32.totalorder %s528_s11, %s426_s24 }
  0x4a   :  { %p433_p9 = por %p432_p8, %p431_p7 }
  0x4c   :  { %p434_p10 = pnand %p433_p9, %p427_p6 }
  0x4e   :  { %437 = shalt.err (!%p434_p10)  }
  0x4f   :  { %72 = dma.hbm_to_vmem [thread:$0]  %s59_s23, 16, %s510_s0, [#allocation3 + $0x2] }
  0x50   :  { %462 = dma.done.wait [#allocation3], 16 }
  0x51   :  { %463 = vsyncadd [#allocation3], 4294967280 }
  0x52   :  { %464 = dma.done.wait [#allocation3 + $0x1], 16 }
  0x53   :  { %465 = vsyncadd [#allocation3 + $0x1], 4294967280 }
  0x54   :  { %466 = dma.done.wait [#allocation3 + $0x2], 16 }
  0x55   :  { %467 = vsyncadd [#allocation3 + $0x2], 4294967280  ;;  %v233_v0 = vld [vmem:[#allocation2] sm:$0xff]  ;;  %s474_s1 = smov [#allocation6]  }
  0x56   :  { %v234_v1 = vmul.f32 %v233_v0, %v233_v0  ;;  %s247_s21 = sshll.u32 %s474_s1, 4  ;;  %s248_s21 = int_to_ptr.vmem [resolvable:$true] %s247_s21 }
  0x57   :  { %s438_s28 = scalar_lea.vmem %s248_s21, 128  ;;  %p443_p12 = scmp.lt.s32.totalorder %s248_s21, %s248_s21 }
  0x58   :  { %235 = vadd.xlane.f32.xlu0 %v234_v1  ;;  %p439_p11 = scmp.ne.s32.totalorder %s248_s21, %s438_s28  ;;  %p444_p13 = scmp.lt.s32.totalorder %s438_s28, %s438_s28 }
  0x5a   :  { %p445_p0 = por %p444_p13, %p443_p12 }
  0x5c   :  { %p446_p1 = pnand %p445_p0, %p439_p11 }
  0xe5   :  { %v236_v2 = vpop.xlane.xlu0 %235 }
  0xe6   :  { %v237_v3 = vmax.f32 %v236_v2, 1e-24 }
  0xe8   :  { %354 = vrsqrt.f32 %v237_v3 }
  0xf2   :  { %v355_v4 = vpop.eup %354 }
  0xf3   :  { %v239_v5 = vmul.f32 %v355_v4, %v233_v0 }
  0xf5   :  { %240 = vst [vmem:[#allocation6] sm:$0xff] %v239_v5 }
  0xf6   :  { %449 = shalt.err (!%p446_p1)
}
  0xf7   :  { %s450_s30 = scalar_lea.hbm %s575_s2, 128 }
  0xf8   :  { %p451_p2 = scmp.ne.s32.totalorder %s575_s2, %s450_s30  ;;  %p454_p3 = scmp.lt.u32.totalorder %s450_s30, %s575_s2 }
  0xfa   :  { %p456_p4 = pnand %p454_p3, %p451_p2 }
  0xfc   :  { %459 = shalt.err (!%p456_p4)
}
  0xfd   :  { %250 = dma.vmem_to_hbm [thread:$0]  %s248_s21, 128, %s575_s2, [#allocation7]  }
  0xfe   :  { %468 = dma.done.wait [#allocation7], 128  }
  0xff   :  { %469 = vsyncadd [#allocation7], 4294967168 }
 0x100   :  { %254 = vsyncpa [#allocation7], 1 }
 0x101   :  { %255 = vsyncmov [#allocation3] }
 0x104   :  { %s256_s9 = vpop.sfrf %255 }
 0x105   :  { %p341_p5 = scmp.ne.s32.totalorder %s256_s9, 0 }
 0x107   :  { %260 = shalt.err (%p341_p5)  }
 0x108   :  { %262 = vsyncmov [#allocation3 + $0x1] }
 0x10b   :  { %s263_s10 = vpop.sfrf %262 }
 0x10c   :  { %p342_p6 = scmp.ne.s32.totalorder %s263_s10, 0 }
 0x10e   :  { %267 = shalt.err (%p342_p6)  }
 0x10f   :  { %269 = vsyncmov [#allocation3 + $0x2] }
 0x112   :  { %s270_s11 = vpop.sfrf %269 }
 0x113   :  { %p343_p7 = scmp.ne.s32.totalorder %s270_s11, 0 }
 0x115   :  { %274 = shalt.err (%p343_p7)  }
 0x116   :  { %276 = vsyncmov [#allocation3 + $0x3] }
 0x119   :  { %s277_s12 = vpop.sfrf %276 }
 0x11a   :  { %p344_p8 = scmp.ne.s32.totalorder %s277_s12, 0 }
 0x11c   :  { %281 = shalt.err (%p344_p8)  }
 0x11d   :  { %283 = vsyncmov [#allocation3 + $0x4] }
 0x120   :  { %s284_s2 = vpop.sfrf %283 }
 0x121   :  { %p345_p9 = scmp.ne.s32.totalorder %s284_s2, 0 }
 0x123   :  { %288 = shalt.err (%p345_p9)  }
 0x124   :  { %290 = vsyncmov [#allocation3 + $0x5] }
 0x127   :  { %s291_s13 = vpop.sfrf %290 }
 0x128   :  { %p346_p10 = scmp.ne.s32.totalorder %s291_s13, 0 }
 0x12a   :  { %295 = shalt.err (%p346_p10)  }
 0x12b   :  { %297 = vsyncmov [#allocation3 + $0x6] }
 0x12e   :  { %s298_s14 = vpop.sfrf %297 }
 0x12f   :  { %p347_p11 = scmp.ne.s32.totalorder %s298_s14, 0 }
 0x131   :  { %302 = shalt.err (%p347_p11)  }
 0x132   :  { %304 = vsyncmov [#allocation3 + $0x7] }
 0x135   :  { %s305_s15 = vpop.sfrf %304 }
 0x136   :  { %p348_p12 = scmp.ne.s32.totalorder %s305_s15, 0 }
 0x138   :  { %309 = shalt.err (%p348_p12)  }

</bundles_post_ra>
